<compile_context>
chip_gen: v7x
topology: tpu7x:2x2x1
jax: 0.10.0
libtpu: 0.0.40
codegen_flags: <defaults>
</compile_context>

<pallas_src>
import jax
import jax.numpy as jnp
import numpy as np
from jax.experimental import pallas as pl
from jax.experimental.pallas import tpu as pltpu


def _output_symmetry_kernel(zs_ref, zs_pi_ref, zd_ref, zd_pi_ref, w_ref, wr_ref, o_ref):
    # zs_ref, zs_pi_ref, zd_ref, zd_pi_ref : (TB, Z)  streamed batch tiles (batch on sublanes)
    # w_ref  : (Z, NY)  resident  W_yd
    # wr_ref : (Z, NY)  resident  -(W_yd @ R)  (columns reversed + negated; folded in wrapper)
    # o_ref  : (TB, 2)  final output layout: col 0 = position term, col 1 = velocity term
    w = w_ref[...]
    wr = wr_ref[...]
    # d = yd(z) - yd(z_pi) @ R  computed as  z @ W + z_pi @ (-(W@R)); f32 accumulation on MXU.
    d_pos = (jnp.dot(zs_ref[...], w, preferred_element_type=jnp.float32)
             + jnp.dot(zs_pi_ref[...], wr, preferred_element_type=jnp.float32))
    d_vel = (jnp.dot(zd_ref[...], w, preferred_element_type=jnp.float32)
             + jnp.dot(zd_pi_ref[...], wr, preferred_element_type=jnp.float32))
    # ||d||_2 over the NY=4 output columns (cheap cross-lane reduce); sqrt lands on the EUP slot.
    h_pos = -jnp.sqrt(jnp.sum(d_pos * d_pos, axis=-1, keepdims=True))   # (TB, 1)
    h_vel = -jnp.sqrt(jnp.sum(d_vel * d_vel, axis=-1, keepdims=True))   # (TB, 1)
    o_ref[...] = jnp.concatenate([h_pos, h_vel], axis=-1).astype(o_ref.dtype)


def output_symmetry_with_vel_forward(zs, zdots, zs_pi, zdots_pi, w_yd, *,
                                     tb=2048, stream_dtype=None,
                                     use_pallas=None, core_parallel=False):
    """Forward pass. Returns (B, 2): [:, 0] = position term, [:, 1] = velocity term.

    tb           : batch tile (sublane axis); 2048-8192 recommended at production sizes.
    stream_dtype : e.g. jnp.bfloat16 to halve streamed HBM bytes (accumulation stays f32).
    use_pallas   : None -> auto (XLA fusion for tiny batches); True forces the kernel.
    core_parallel: set True on v7x to shard batch tiles across its 2 TensorCores.
    """
    B, Z = zs.shape
    NY = w_yd.shape[1]
    assert tb % 8 == 0, "batch tile must be a multiple of the 8-row sublane tile"

    # Fold the anti-diagonal R and the subtraction sign into a second weight:
    #   y_pi @ R == y_pi with columns reversed  =>  W_r = -(W_yd @ R) = -W_yd[:, ::-1].
    w_r = -w_yd[:, ::-1]

    if use_pallas is None:
        # Below ~1K rows the fixed launch / per-tile overhead exceeds the useful HBM traffic.
        use_pallas = B >= 1024
    if not use_pallas:
        d_pos = zs @ w_yd + zs_pi @ w_r
        d_vel = zdots @ w_yd + zdots_pi @ w_r
        return jnp.stack([-jnp.sqrt(jnp.sum(d_pos * d_pos, axis=-1)),
                          -jnp.sqrt(jnp.sum(d_vel * d_vel, axis=-1))], axis=-1)

    if stream_dtype is not None:
        zs = zs.astype(stream_dtype)
        zdots = zdots.astype(stream_dtype)
        zs_pi = zs_pi.astype(stream_dtype)
        zdots_pi = zdots_pi.astype(stream_dtype)
        w_yd = w_yd.astype(stream_dtype)
        w_r = w_r.astype(stream_dtype)

    # Don't allocate tiles larger than the (sublane-rounded) batch.
    tb = min(tb, ((B + 7) // 8) * 8)
    grid = (pl.cdiv(B, tb),)   # partial trailing block is handled by Pallas masking

    itemsize = jnp.dtype(zs.dtype).itemsize
    cost = pl.CostEstimate(
        flops=8 * B * Z * NY,                 # 4 dots of (B,Z)@(Z,NY)
        transcendentals=2 * B,                # two sqrt per row
        bytes_accessed=4 * B * Z * itemsize + 2 * Z * NY * itemsize + B * 2 * 4,
    )

    batch_spec = pl.BlockSpec((tb, Z), lambda i: (i, 0))     # batch tiled on sublanes
    weight_spec = pl.BlockSpec((Z, NY), lambda i: (0, 0))    # resident weights

    dim_sem = (pltpu.CORE_PARALLEL,) if core_parallel else ("parallel",)

    out = pl.pallas_call(
        _output_symmetry_kernel,
        out_shape=jax.ShapeDtypeStruct((B, 2), jnp.float32),
        grid_spec=pltpu.PrefetchScalarGridSpec(
            num_scalar_prefetch=0,
            grid=grid,
            in_specs=[batch_spec, batch_spec, batch_spec, batch_spec,
                      weight_spec, weight_spec],
            out_specs=pl.BlockSpec((tb, 2), lambda i: (i, 0)),   # already final (B, 2) layout
        ),
        compiler_params=pltpu.CompilerParams(dimension_semantics=dim_sem),
        cost_estimate=cost,
    )(zs, zs_pi, zdots, zdots_pi, w_yd, w_r)
    return out


def reference_forward(zs, zdots, zs_pi, zdots_pi, w_yd, R):
    y, y_pi = zs @ w_yd, zs_pi @ w_yd
    yd, yd_pi = zdots @ w_yd, zdots_pi @ w_yd
    h_pos = -jnp.linalg.norm(y - y_pi @ R, ord=2, axis=-1)
    h_vel = -jnp.linalg.norm(yd - yd_pi @ R, ord=2, axis=-1)
    return jnp.stack([h_pos, h_vel], axis=-1)


if __name__ == "__main__":
    B = 200    # deliberately not a multiple of the tile: exercises the masked edge block
    Z = 32     # state dimension fed to zdyn.yd
    NY = 4     # yd output dimension (fixed by the 4x4 R buffer)

    key = jax.random.PRNGKey(0)
    k1, k2, k3, k4, k5 = jax.random.split(key, 5)
    zs = jax.random.normal(k1, (B, Z), dtype=jnp.float32)
    zdots = jax.random.normal(k2, (B, Z), dtype=jnp.float32)
    zs_pi = jax.random.normal(k3, (B, Z), dtype=jnp.float32)      # stands in for zdyn.reset_map(zs)
    zdots_pi = jax.random.normal(k4, (B, Z), dtype=jnp.float32)   # stands in for zdyn.zdot(reset_map(zs))
    w_yd = jax.random.normal(k5, (Z, NY), dtype=jnp.float32) / np.sqrt(Z)
    # Anti-diagonal symmetry matrix R, exactly as registered in the module
    # (used only by the reference; the kernel gets it folded into the weights).
    R = jnp.array(
        [[0, 0, 0, 1],
         [0, 0, 1, 0],
         [0, 1, 0, 0],
         [1, 0, 0, 0]], dtype=jnp.float32)

    ref = reference_forward(zs, zdots, zs_pi, zdots_pi, w_yd, R)

    # f32 streaming, small tile so the test exercises a multi-tile grid + masked edge block.
    out = output_symmetry_with_vel_forward(zs, zdots, zs_pi, zdots_pi, w_yd,
                                           tb=64, use_pallas=True)
    jax.block_until_ready(out)
    np.testing.assert_allclose(np.asarray(out), np.asarray(ref), rtol=1e-5, atol=1e-5)
    assert out.shape == (B, 2)

    # bf16 streaming variant (halves HBM traffic in production); relaxed tolerance.
    out_bf16 = output_symmetry_with_vel_forward(zs, zdots, zs_pi, zdots_pi, w_yd,
                                                tb=64, use_pallas=True,
                                                stream_dtype=jnp.bfloat16)
    jax.block_until_ready(out_bf16)
    np.testing.assert_allclose(np.asarray(out_bf16), np.asarray(ref), rtol=5e-2, atol=5e-2)

    print("KERNEL_OK")
</pallas_src>

<mosaic_0001>
module attributes {stable_mosaic.version = 11 : i64} {
  func.func @_output_symmetry_kernel(%arg0: i32, %arg1: memref<64x32xf32, #tpu.memory_space<vmem>>, %arg2: memref<64x32xf32, #tpu.memory_space<vmem>>, %arg3: memref<64x32xf32, #tpu.memory_space<vmem>>, %arg4: memref<64x32xf32, #tpu.memory_space<vmem>>, %arg5: memref<32x4xf32, #tpu.memory_space<vmem>>, %arg6: memref<32x4xf32, #tpu.memory_space<vmem>>, %arg7: memref<64x2xf32, #tpu.memory_space<vmem>>) attributes {dimension_semantics = [#tpu.dimension_semantics<parallel>], iteration_bounds = array<i64: 4>, scalar_prefetch = 0 : i64, scratch_operands = 0 : i64, tpu.core_type = #tpu.core_type<tc>, window_params = [{transform_indices = @transform_0, window_bounds = array<i64: 64, 32>}, {transform_indices = @transform_1, window_bounds = array<i64: 64, 32>}, {transform_indices = @transform_2, window_bounds = array<i64: 64, 32>}, {transform_indices = @transform_3, window_bounds = array<i64: 64, 32>}, {pipeline_mode = #tpu.pipeline_mode<synchronous>, transform_indices = @transform_4, window_bounds = array<i64: 32, 4>}, {pipeline_mode = #tpu.pipeline_mode<synchronous>, transform_indices = @transform_5, window_bounds = array<i64: 32, 4>}, {transform_indices = @transform_6, window_bounds = array<i64: 64, 2>}]} {
    %c0 = arith.constant 0 : index
    %c0_0 = arith.constant 0 : index
    %0 = vector.load %arg5[%c0, %c0_0] : memref<32x4xf32, #tpu.memory_space<vmem>>, vector<32x4xf32>
    %c0_1 = arith.constant 0 : index
    %c0_2 = arith.constant 0 : index
    %1 = vector.load %arg6[%c0_1, %c0_2] : memref<32x4xf32, #tpu.memory_space<vmem>>, vector<32x4xf32>
    %c0_3 = arith.constant 0 : index
    %c0_4 = arith.constant 0 : index
    %2 = vector.load %arg1[%c0_3, %c0_4] : memref<64x32xf32, #tpu.memory_space<vmem>>, vector<64x32xf32>
    %cst = arith.constant dense<0.000000e+00> : vector<64x4xf32>
    %3 = tpu.matmul %2, %0, %cst {dimension_numbers = #tpu.dot_dimension_numbers<[1], [0], [0], [1], [0, 0, 1, 1], [], []>} : vector<64x32xf32>, vector<32x4xf32>, vector<64x4xf32> -> vector<64x4xf32>
    %c0_5 = arith.constant 0 : index
    %c0_6 = arith.constant 0 : index
    %4 = vector.load %arg2[%c0_5, %c0_6] : memref<64x32xf32, #tpu.memory_space<vmem>>, vector<64x32xf32>
    %cst_7 = arith.constant dense<0.000000e+00> : vector<64x4xf32>
    %5 = tpu.matmul %4, %1, %cst_7 {dimension_numbers = #tpu.dot_dimension_numbers<[1], [0], [0], [1], [0, 0, 1, 1], [], []>} : vector<64x32xf32>, vector<32x4xf32>, vector<64x4xf32> -> vector<64x4xf32>
    %6 = arith.addf %3, %5 : vector<64x4xf32>
    %c0_8 = arith.constant 0 : index
    %c0_9 = arith.constant 0 : index
    %7 = vector.load %arg3[%c0_8, %c0_9] : memref<64x32xf32, #tpu.memory_space<vmem>>, vector<64x32xf32>
    %cst_10 = arith.constant dense<0.000000e+00> : vector<64x4xf32>
    %8 = tpu.matmul %7, %0, %cst_10 {dimension_numbers = #tpu.dot_dimension_numbers<[1], [0], [0], [1], [0, 0, 1, 1], [], []>} : vector<64x32xf32>, vector<32x4xf32>, vector<64x4xf32> -> vector<64x4xf32>
    %c0_11 = arith.constant 0 : index
    %c0_12 = arith.constant 0 : index
    %9 = vector.load %arg4[%c0_11, %c0_12] : memref<64x32xf32, #tpu.memory_space<vmem>>, vector<64x32xf32>
    %cst_13 = arith.constant dense<0.000000e+00> : vector<64x4xf32>
    %10 = tpu.matmul %9, %1, %cst_13 {dimension_numbers = #tpu.dot_dimension_numbers<[1], [0], [0], [1], [0, 0, 1, 1], [], []>} : vector<64x32xf32>, vector<32x4xf32>, vector<64x4xf32> -> vector<64x4xf32>
    %11 = arith.addf %8, %10 : vector<64x4xf32>
    %12 = arith.mulf %6, %6 : vector<64x4xf32>
    %cst_14 = arith.constant dense<0.000000e+00> : vector<64xf32>
    %13 = vector.multi_reduction <add>, %12, %cst_14 [1] : vector<64x4xf32> to vector<64xf32>
    %14 = vector.shape_cast %13 : vector<64xf32> to vector<64x1xf32>
    %15 = math.sqrt %14 : vector<64x1xf32>
    %cst_15 = arith.constant 0.000000e+00 : f32
    %16 = vector.broadcast %cst_15 : f32 to vector<64x1xf32>
    %17 = arith.subf %16, %15 : vector<64x1xf32>
    %18 = arith.mulf %11, %11 : vector<64x4xf32>
    %cst_16 = arith.constant dense<0.000000e+00> : vector<64xf32>
    %19 = vector.multi_reduction <add>, %18, %cst_16 [1] : vector<64x4xf32> to vector<64xf32>
    %20 = vector.shape_cast %19 : vector<64xf32> to vector<64x1xf32>
    %21 = math.sqrt %20 : vector<64x1xf32>
    %cst_17 = arith.constant 0.000000e+00 : f32
    %22 = vector.broadcast %cst_17 : f32 to vector<64x1xf32>
    %23 = arith.subf %22, %21 : vector<64x1xf32>
    %24 = tpu.concatenate %17, %23 in 1 : vector<64x1xf32>, vector<64x1xf32> -> vector<64x2xf32>
    %c0_18 = arith.constant 0 : index
    %c0_19 = arith.constant 0 : index
    %25 = vector.load %arg7[%c0_18, %c0_19] : memref<64x2xf32, #tpu.memory_space<vmem>>, vector<64x2xf32>
    tpu.vector_store %arg7[%c0_18, %c0_19], %24 {strides = array<i32>} : memref<64x2xf32, #tpu.memory_space<vmem>>, vector<64x2xf32>,
    return
  }
  func.func @transform_0(%arg0: i32) -> (i32, i32) {
    %c0_i32 = arith.constant 0 : i32
    %c0_i32_0 = arith.constant 0 : i32
    return %arg0, %c0_i32 : i32, i32
  }
  func.func @transform_1(%arg0: i32) -> (i32, i32) {
    %c0_i32 = arith.constant 0 : i32
    %c0_i32_0 = arith.constant 0 : i32
    return %arg0, %c0_i32 : i32, i32
  }
  func.func @transform_2(%arg0: i32) -> (i32, i32) {
    %c0_i32 = arith.constant 0 : i32
    %c0_i32_0 = arith.constant 0 : i32
    return %arg0, %c0_i32 : i32, i32
  }
  func.func @transform_3(%arg0: i32) -> (i32, i32) {
    %c0_i32 = arith.constant 0 : i32
    %c0_i32_0 = arith.constant 0 : i32
    return %arg0, %c0_i32 : i32, i32
  }
  func.func @transform_4(%arg0: i32) -> (i32, i32) {
    %c0_i32 = arith.constant 0 : i32
    %c0_i32_0 = arith.constant 0 : i32
    %c0_i32_1 = arith.constant 0 : i32
    return %c0_i32, %c0_i32_0 : i32, i32
  }
  func.func @transform_5(%arg0: i32) -> (i32, i32) {
    %c0_i32 = arith.constant 0 : i32
    %c0_i32_0 = arith.constant 0 : i32
    %c0_i32_1 = arith.constant 0 : i32
    return %c0_i32, %c0_i32_0 : i32, i32
  }
  func.func @transform_6(%arg0: i32) -> (i32, i32) {
    %c0_i32 = arith.constant 0 : i32
    %c0_i32_0 = arith.constant 0 : i32
    return %arg0, %c0_i32 : i32, i32
  }
}

</mosaic_0001>

<bundles_post_ra>
// kernel: tpu_custom_call.1
= control target key start
LH: loop header
LB: loop body
LE: loop exit
PB: predicated region body
PF: predicated region fallthrough
CT: control target
= control target key end

     0   :  { %s1930_s21 = smov 0   ;;  %s1932_s22 = smov 0   ;;  %s2300_s0 = inlined_call_operand.vmem [shape: f32[200,32], index: 0, kind: input, shape index: {}]   ;;  %s2301_s1 = inlined_call_operand.vmem [shape: f32[200,32], index: 1, kind: input, shape index: {}]   ;;  %s2302_s2 = inlined_call_operand.vmem [shape: f32[200,32], index: 2, kind: input, shape index: {}]   ;;  %s2303_s3 = inlined_call_operand.vmem [shape: f32[200,32], index: 3, kind: input, shape index: {}]   ;;  %s2304_s4 = inlined_call_operand.vmem [shape: f32[32,4], index: 4, kind: input, shape index: {}]   ;;  %s2305_s5 = inlined_call_operand.vmem [shape: f32[32,4], index: 5, kind: input, shape index: {}]   ;;  %s2306_s6 = inlined_call_operand.vmem [shape: f32[200,2], index: 6, kind: output, shape index: {}]  }
   0x1   :  { %s1934_s23 = smov 0  }
   0x2 LB: > { %s1943_s24 = sadd.s32 4294967295, %s1861_s23   ;;  %s1945_s25 = sadd.s32 1, %s1861_s23   ;;  %s1861_s23 = sphi %s1934_s23, %s2313_s23   ;;  %s1857_s22 = sphi %s1932_s22, %s2312_s22   ;;  %s1853_s21 = sphi %s1930_s21, %s2311_s21  }
   0x3   : > { %s166_s26 = ssub.s32 %s1861_s23, %s1945_s25  ;;  %s169_s27 = sadd.s32 1, %s1857_s22 }
   0x4   : > { %p167_p0 = scmp.eq.s32.totalorder %s166_s26, 0  ;;  %p179_p1 = scmp.ne.s32.totalorder %s1857_s22, %s1853_s21 }
   0x5   : > { %p180_p2 = scmp.eq.s32.totalorder %s1943_s24, 3  ;;  %p1449_p3 = scmp.ge.s32.totalorder %s1861_s23, 1 }
   0x6   : > { %s1953_s28 = scalar_select %p167_p0, %s1857_s22, %s169_s27  }
   0x7   : > { %p1955_p4 = por %p180_p2, %p179_p1  ;;  %p278_p5 = scmp.lt.s32.totalorder %s1861_s23, 5 }
   0x9   : > { %p279_p6 = pnand %p1449_p3, %p278_p5 }
   0xa   : > { %v403_v0 = vld [vmem:[%s2305_s5] sm:$0xff] (!%p279_p6)  ;;  %v404_v1 = vld [vmem:[%s2305_s5 + $0x8] sm:$0xff] (!%p279_p6)  ;;  %v405_v2 = vld [vmem:[%s2305_s5 + $0x10] sm:$0xff] (!%p279_p6)  ;;  %s1969_s12 = sshll.u32 (!%p279_p6), %s1943_s24, 3  ;;  %vm423_vm0 = vcmask (!%p279_p6), 261120   ;;  %vm964_vm1 = vcmask (!%p279_p6), 31744  }
   0xb   : > { %282 = sbr.rel (%p279_p6) target bundleno = 495 (0x1ef), region = 44  ;;  %v1639_v3 = vpack.c.bf16 (!%p279_p6), %v404_v1, %v403_v0  ;;  %v406_v4 = vld [vmem:[%s2305_s5 + $0x18] sm:$0xff] (!%p279_p6)  ;;  %p343_p7 = scmp.lt.s32.totalorder (!%p279_p6), %s1969_s12, 24  ;;  %v399_v6 = vld [vmem:[%s2304_s4] sm:$0xff] (!%p279_p6)  ;;  %v400_v7 = vld [vmem:[%s2304_s4 + $0x8] sm:$0xff] (!%p279_p6)  ;;  %vm1149_vm2 = vcmask (!%p279_p6), 7168  }
   0xc   : > { %v1643_v5 = vpack.c.bf16 (!%p279_p6), %v406_v4, %v405_v2  ;;  %v1647_v8 = vpack.c.bf16 (!%p279_p6), %v400_v7, %v399_v6  ;;  %v401_v9 = vld [vmem:[%s2304_s4 + $0x10] sm:$0xff] (!%p279_p6)  ;;  %v402_v12 = vld [vmem:[%s2304_s4 + $0x18] sm:$0xff] (!%p279_p6)  ;;  %vm1158_vm5 = vcmask (!%p279_p6), 15360  }
   0xd   : > { %1640 = vmatprep.subr.bf16.mxu0 (!%p279_p6), %v1639_v3  ;;  %1656 = vmatprep.subr.bf16.mxu1 (!%p279_p6), %v1639_v3  ;;  %v1651_v17 = vpack.c.bf16 (!%p279_p6), %v402_v12, %v401_v9 }
   0xe   : > { %1642 = vmatpush3.bf16.msra.mxu0 (!%p279_p6), %v1639_v3  ;;  %1658 = vmatpush3.bf16.msra.mxu1 (!%p279_p6), %v1639_v3 }
   0xf   : > { %1644 = vmatprep.subr.bf16.mxu0 (!%p279_p6), %v1643_v5  ;;  %1660 = vmatprep.subr.bf16.mxu1 (!%p279_p6), %v1643_v5 }
  0x12   : > { %s344_s15 = scalar_select %p343_p7, %s1969_s12, 24  ;;  %1646 = vmatpush3.bf16.msra.mxu0 %v1643_v5  ;;  %1662 = vmatpush3.bf16.msra.mxu1 %v1643_v5 }
  0x13   : > { %1648 = vmatprep.subr.bf16.mxu0 %v1647_v8  ;;  %1664 = vmatprep.subr.bf16.mxu1 %v1647_v8  ;;  %s1175_s26 = ssub.s32 (%p1955_p4), 25, %s1969_s12 }
  0x14   : > { %s1982_s20 = sshll.u32 %s344_s15, 3  ;;  %p1176_p8 = scmp.lt.s32.totalorder (%p1955_p4), %s1175_s26, 8 }
  0x15   : > { %s1988_s27 = scalar_lea.vmem %s2301_s1, %s1982_s20  ;;  %s1994_s8 = scalar_lea.vmem %s2303_s3, %s1982_s20 }
  0x16   : > { %v415_v10 = vld [vmem:[%s1988_s27] sm:$0xff]  ;;  %v416_v13 = vld [vmem:[%s1988_s27 + $0x8] sm:$0xff]  ;;  %v417_v15 = vld [vmem:[%s1988_s27 + $0x10] sm:$0xff]  ;;  %s2030_s16 = scalar_lea.vmem %s2300_s0, %s1982_s20  ;;  %s2036_s19 = scalar_lea.vmem %s2302_s2, %s1982_s20 }
  0x17   : > { %v690_v11 = vld [vmem:[%s1994_s8] sm:$0xff]  ;;  %v691_v14 = vld [vmem:[%s1994_s8 + $0x8] sm:$0xff]  ;;  %1567 = vmatprep.mubr.msk.f32.mxu0 %vm423_vm0, %v415_v10  ;;  %v692_v16 = vld [vmem:[%s1994_s8 + $0x10] sm:$0xff]  ;;  %s335_s20 = sand.u32 1, %s1853_s21  }
  0x18   : > { %1607 = vmatprep.mubr.msk.f32.mxu1 %vm423_vm0, %v690_v11  ;;  %1568 = vmatmul.mubr.msk.f32.vlgmr.msra.gmra.mrb[0].mxu0 %vm423_vm0, %v416_v13  ;;  %v418_v18 = vld [vmem:[%s1988_s27 + $0x18] sm:$0xff]  ;;  %v419_v20 = vld [vmem:[%s1988_s27 + $0x20] sm:$0xff]  ;;  %v420_v22 = vld [vmem:[%s1988_s27 + $0x28] sm:$0xff]  ;;  %s1450_s23 = sshll.u32 %s335_s20, 6 }
  0x19   : > { %1608 = vmatmul.mubr.msk.f32.vlgmr.msra.gmra.mrb[0].mxu1 %vm423_vm0, %v691_v14  ;;  %1650 = vmatpush3.bf16.msra.mxu0 %v1647_v8  ;;  %v693_v19 = vld [vmem:[%s1994_s8 + $0x18] sm:$0xff]  ;;  %v694_v21 = vld [vmem:[%s1994_s8 + $0x20] sm:$0xff]  ;;  %v695_v23 = vld [vmem:[%s1994_s8 + $0x28] sm:$0xff]  ;;  %s2132_s21 = scalar_lea.vmem [#allocation2], %s1450_s23  }
  0x1a   : > { %1666 = vmatpush3.bf16.msra.mxu1 %v1647_v8  ;;  %1570 = vmatprep.mubr.msk.f32.mxu0 %vm423_vm0, %v417_v15  ;;  %v421_v24 = vld [vmem:[%s1988_s27 + $0x30] sm:$0xff]  ;;  %v422_v26 = vld [vmem:[%s1988_s27 + $0x38] sm:$0xff]  ;;  %v407_v28 = vld [vmem:[%s2030_s16] sm:$0xff]  ;;  %s1508_s27 = sshll.u32 (%p1955_p4), %s1943_s24, 6 }
  0x1b   : > { %1610 = vmatprep.mubr.msk.f32.mxu1 %vm423_vm0, %v692_v16  ;;  %1652 = vmatprep.subr.bf16.mxu0 %v1651_v17  ;;  %v696_v25 = vld [vmem:[%s1994_s8 + $0x30] sm:$0xff]  ;;  %v697_v27 = vld [vmem:[%s1994_s8 + $0x38] sm:$0xff]  ;;  %v682_v29 = vld [vmem:[%s2036_s19] sm:$0xff]  ;;  %s2246_s8 = scalar_lea.vmem (%p1955_p4), %s2306_s6, %s1508_s27  }
  0x1c   : > { %1668 = vmatprep.subr.bf16.mxu1 %v1651_v17  ;;  %1571 = vmatmul.mubr.msk.f32.gmra.mrb[2].mxu0 %vm423_vm0, %v418_v18  ;;  %v408_v30 = vld [vmem:[%s2030_s16 + $0x8] sm:$0xff]  ;;  %v409_v32 = vld [vmem:[%s2030_s16 + $0x10] sm:$0xff]  ;;  %v410_v34 = vld [vmem:[%s2030_s16 + $0x18] sm:$0xff] }
  0x1d   : > { %1611 = vmatmul.mubr.msk.f32.gmra.mrb[2].mxu1 %vm423_vm0, %v693_v19  ;;  %1573 = vmatprep.mubr.msk.f32.mxu0 %vm423_vm0, %v419_v20  ;;  %v683_v31 = vld [vmem:[%s2036_s19 + $0x8] sm:$0xff]  ;;  %v684_v33 = vld [vmem:[%s2036_s19 + $0x10] sm:$0xff]  ;;  %v685_v35 = vld [vmem:[%s2036_s19 + $0x18] sm:$0xff] }
  0x1e   : > { %1613 = vmatprep.mubr.msk.f32.mxu1 %vm423_vm0, %v694_v21  ;;  %1654 = vmatpush3.bf16.msra.mxu0 %v1651_v17  ;;  %v411_v36 = vld [vmem:[%s2030_s16 + $0x20] sm:$0xff]  ;;  %v412_v38 = vld [vmem:[%s2030_s16 + $0x28] sm:$0xff]  ;;  %v413_v40 = vld [vmem:[%s2030_s16 + $0x30] sm:$0xff] }
  0x1f   : > { %1670 = vmatpush3.bf16.msra.mxu1 %v1651_v17  ;;  %v686_v37 = vld [vmem:[%s2036_s19 + $0x20] sm:$0xff]  ;;  %v687_v39 = vld [vmem:[%s2036_s19 + $0x28] sm:$0xff]  ;;  %v688_v41 = vld [vmem:[%s2036_s19 + $0x30] sm:$0xff] }
  0x20   : > { %1574 = vmatmul.mubr.msk.f32.gmra.mrb[4].mxu0 %vm423_vm0, %v420_v22  ;;  %v414_v42 = vld [vmem:[%s2030_s16 + $0x38] sm:$0xff] }
  0x21   : > { %1614 = vmatmul.mubr.msk.f32.gmra.mrb[4].mxu1 %vm423_vm0, %v695_v23  ;;  %1576 = vmatprep.mubr.msk.f32.mxu0 %vm423_vm0, %v421_v24  ;;  %v689_v43 = vld [vmem:[%s2036_s19 + $0x38] sm:$0xff] }
  0x22   : > { %1616 = vmatprep.mubr.msk.f32.mxu1 %vm423_vm0, %v696_v25 }
  0x24   : > { %1577 = vmatmul.mubr.msk.f32.gmra.mrb[6].mxu0 %vm423_vm0, %v422_v26 }
  0x25   : > { %1617 = vmatmul.mubr.msk.f32.gmra.mrb[6].mxu1 %vm423_vm0, %v697_v27  ;;  %1587 = vmatprep.mubr.msk.f32.mxu0 %vm423_vm0, %v407_v28 }
  0x26   : > { %1627 = vmatprep.mubr.msk.f32.mxu1 %vm423_vm0, %v682_v29 }
  0x28   : > { %1588 = vmatmul.mubr.msk.f32.vlgmr.msra.gmra.mrb[0].mxu0 %vm423_vm0, %v408_v30 }
  0x29   : > { %1628 = vmatmul.mubr.msk.f32.vlgmr.msra.gmra.mrb[0].mxu1 %vm423_vm0, %v683_v31  ;;  %1590 = vmatprep.mubr.msk.f32.mxu0 %vm423_vm0, %v409_v32 }
  0x2a   : > { %1630 = vmatprep.mubr.msk.f32.mxu1 %vm423_vm0, %v684_v33 }
  0x2c   : > { %1591 = vmatmul.mubr.msk.f32.gmra.mrb[2].mxu0 %vm423_vm0, %v410_v34 }
  0x2d   : > { %1631 = vmatmul.mubr.msk.f32.gmra.mrb[2].mxu1 %vm423_vm0, %v685_v35  ;;  %1593 = vmatprep.mubr.msk.f32.mxu0 %vm423_vm0, %v411_v36 }
  0x2e   : > { %1633 = vmatprep.mubr.msk.f32.mxu1 %vm423_vm0, %v686_v37 }
  0x30   : > { %1594 = vmatmul.mubr.msk.f32.gmra.mrb[4].mxu0 %vm423_vm0, %v412_v38 }
  0x31   : > { %1634 = vmatmul.mubr.msk.f32.gmra.mrb[4].mxu1 %vm423_vm0, %v687_v39  ;;  %1596 = vmatprep.mubr.msk.f32.mxu0 %vm423_vm0, %v413_v40 }
  0x32   : > { %1636 = vmatprep.mubr.msk.f32.mxu1 %vm423_vm0, %v688_v41 }
  0x34   : > { %1597 = vmatmul.mubr.msk.f32.gmra.mrb[6].mxu0 %vm423_vm0, %v414_v42 }
  0x35   : > { %1637 = vmatmul.mubr.msk.f32.gmra.mrb[6].mxu1 %vm423_vm0, %v689_v43 }
  0xfb   : > { %v1589_v44 = vpop.f32.mrb[0].mxu0 }
  0xfc   : > { %v1629_v45 = vpop.f32.mrb[0].mxu1  ;;  %v957_v46 = vmul.f32 %v1589_v44, %v1589_v44  ;;  %v643_v48 = vpop.f32.mrb[1].mxu0 }
  0xfd   : > { %v1054_v47 = vmul.f32 %v1629_v45, %v1629_v45  ;;  %v917_v49 = vpop.f32.mrb[1].mxu1  ;;  %v956_v50 = vmul.f32 %v643_v48, %v643_v48 }
  0xfe   : > { %v968_v52 = vsel %vm964_vm1, %v957_v46, 0.0  ;;  %v1053_v58 = vmul.f32 %v917_v49, %v917_v49 }
  0xff   : > { %v1064_v51 = vsel %vm964_vm1, %v1054_v47, 0.0  ;;  %969 = vadd.xlane.f32.xlu0 %v968_v52  ;;  %v1592_v54 = vpop.f32.mrb[2].mxu0  ;;  %v965_v60 = vsel %vm964_vm1, %v956_v50, 0.0 }
 0x100   : > { %1065 = vadd.xlane.f32.xlu1 %v1064_v51  ;;  %v1632_v53 = vpop.f32.mrb[2].mxu1  ;;  %v959_v55 = vmul.f32 %v1592_v54, %v1592_v54  ;;  %v653_v56 = vpop.f32.mrb[3].mxu0  ;;  %v1061_v4 = vsel %vm964_vm1, %v1053_v58, 0.0 }
 0x101   : > { %v927_v57 = vpop.f32.mrb[3].mxu1  ;;  %v1056_v59 = vmul.f32 %v1632_v53, %v1632_v53  ;;  %v958_v2 = vmul.f32 %v653_v56, %v653_v56 }
 0x102   : > { %v974_v61 = vsel %vm964_vm1, %v959_v55, 0.0  ;;  %v1055_v3 = vmul.f32 %v927_v57, %v927_v57 }
 0x103   : > { %966 = vadd.xlane.f32.xlu0 %v965_v60  ;;  %v1595_v63 = vpop.f32.mrb[4].mxu0  ;;  %v1070_v5 = vsel %vm964_vm1, %v1056_v59, 0.0  ;;  %v971_v13 = vsel %vm964_vm1, %v958_v2, 0.0 }
 0x104   : > { %v1635_v62 = vpop.f32.mrb[4].mxu1  ;;  %975 = vadd.xlane.f32.xlu1 %v974_v61  ;;  %v663_v0 = vpop.f32.mrb[5].mxu0  ;;  %v961_v10 = vmul.f32 %v1595_v63, %v1595_v63  ;;  %v1067_v12 = vsel %vm964_vm1, %v1055_v3, 0.0 }
 0x105   : > { %v937_v1 = vpop.f32.mrb[5].mxu1  ;;  %v960_v11 = vmul.f32 %v663_v0, %v663_v0  ;;  %v1058_v14 = vmul.f32 %v1635_v62, %v1635_v62 }
 0x106   : > { %v1057_v15 = vmul.f32 %v937_v1, %v937_v1  ;;  %v980_v16 = vsel %vm964_vm1, %v961_v10, 0.0 }
 0x107   : > { %1062 = vadd.xlane.f32.xlu0 %v1061_v4  ;;  %v1598_v7 = vpop.f32.mrb[6].mxu0  ;;  %v977_v17 = vsel %vm964_vm1, %v960_v11, 0.0  ;;  %v1076_v20 = vsel %vm964_vm1, %v1058_v14, 0.0 }
 0x108   : > { %v1638_v6 = vpop.f32.mrb[6].mxu1  ;;  %1071 = vadd.xlane.f32.xlu1 %v1070_v5  ;;  %v673_v8 = vpop.f32.mrb[7].mxu0  ;;  %v963_v18 = vmul.f32 %v1598_v7, %v1598_v7  ;;  %v1073_v21 = vsel %vm964_vm1, %v1057_v15, 0.0 }
 0x109   : > { %v947_v9 = vpop.f32.mrb[7].mxu1  ;;  %v962_v19 = vmul.f32 %v673_v8, %v673_v8  ;;  %v1060_v22 = vmul.f32 %v1638_v6, %v1638_v6 }
 0x10a   : > { %v1059_v23 = vmul.f32 %v947_v9, %v947_v9  ;;  %v986_v24 = vsel %vm964_vm1, %v963_v18, 0.0 }
 0x10b   : > { %1068 = vadd.xlane.f32.xlu0 %v1067_v12  ;;  %v983_v25 = vsel %vm964_vm1, %v962_v19, 0.0  ;;  %v1082_v26 = vsel %vm964_vm1, %v1060_v22, 0.0 }
 0x10c   : > { %972 = vadd.xlane.f32.xlu1 %v971_v13  ;;  %v1079_v27 = vsel %vm964_vm1, %v1059_v23, 0.0 }
 0x10f   : > { %978 = vadd.xlane.f32.xlu0 %v977_v17 }
 0x110   : > { %981 = vadd.xlane.f32.xlu1 %v980_v16 }
 0x113   : > { %1074 = vadd.xlane.f32.xlu0 %v1073_v21 }
 0x114   : > { %1077 = vadd.xlane.f32.xlu1 %v1076_v20 }
 0x117   : > { %984 = vadd.xlane.f32.xlu0 %v983_v25 }
 0x118   : > { %987 = vadd.xlane.f32.xlu1 %v986_v24 }
 0x11b   : > { %1080 = vadd.xlane.f32.xlu0 %v1079_v27 }
 0x11c   : > { %1083 = vadd.xlane.f32.xlu1 %v1082_v26 }
 0x18c   : > { %v970_v29 = vpop.xlane.xlu0 %969 }
 0x18d   : > { %v1066_v28 = vpop.xlane.xlu1 %1065  ;;  %vm998_vm6 = vcmp.eq.f32.partialorder %v970_v29, inf  ;;  %vm1000_vm7 = vcmp.eq.f32.partialorder %v970_v29, 0.0  ;;  %v1001_v42 = vand.u32 2147483648, %v970_v29 }
 0x18e   : > { %1775 = vrsqrt.f32 %v1066_v28  ;;  %vm1094_vm3 = vcmp.eq.f32.partialorder %v1066_v28, inf  ;;  %vm1096_vm4 = vcmp.eq.f32.partialorder %v1066_v28, 0.0  ;;  %v1097_v39 = vand.u32 2147483648, %v1066_v28 }
 0x18f   : > { %1777 = vrsqrt.f32 %v970_v29 }
 0x190   : > { %v2094_v30 = vpop.xlane.xlu0 %966 }
 0x191   : > { %v2096_v31 = vpop.xlane.xlu1 %975  ;;  %1779 = vrsqrt.f32 %v2094_v30  ;;  %vm991_vm8 = vcmp.eq.f32.partialorder %v2094_v30, inf  ;;  %vm993_vm9 = vcmp.eq.f32.partialorder %v2094_v30, 0.0  ;;  %v994_v50 = vand.u32 2147483648, %v2094_v30 }
 0x192   : > { %1781 = vrsqrt.f32 %v2096_v31  ;;  %vm1012_vm10 = vcmp.eq.f32.partialorder %v2096_v31, inf  ;;  %vm1014_vm11 = vcmp.eq.f32.partialorder %v2096_v31, 0.0  ;;  %v1015_v56 = vand.u32 2147483648, %v2096_v31 }
 0x194   : > { %v2100_v32 = vpop.xlane.xlu0 %1062 }
 0x195   : > { %v2102_v33 = vpop.xlane.xlu1 %1071  ;;  %1783 = vrsqrt.f32 %v2100_v32  ;;  %vm1087_vm12 = vcmp.eq.f32.partialorder %v2100_v32, inf  ;;  %vm1089_vm13 = vcmp.eq.f32.partialorder %v2100_v32, 0.0  ;;  %v1090_v62 = vand.u32 2147483648, %v2100_v32 }
 0x196   : > { %1785 = vrsqrt.f32 %v2102_v33  ;;  %vm1108_vm14 = vcmp.eq.f32.partialorder %v2102_v33, inf  ;;  %vm1110_vm15 = vcmp.eq.f32.partialorder %v2102_v33, 0.0  ;;  %v1111_v3 = vand.u32 2147483648, %v2102_v33 }
 0x198   : > { %v1776_v34 = vpop.eup %1775  ;;  %v2107_v37 = vpop.xlane.xlu0 %1068 }
 0x199   : > { %v1778_v35 = vpop.eup %1777  ;;  %v1093_v36 = vmul.f32 %v1776_v34, %v1066_v28  ;;  %v2109_v38 = vpop.xlane.xlu1 %972  ;;  %1787 = vrsqrt.f32 %v2107_v37  ;;  %vm1101_vm0 = vcmp.eq.f32.partialorder %v2107_v37, inf  ;;  %vm1103_vm1 = vcmp.eq.f32.partialorder %v2107_v37, 0.0 }
 0x19a   : > { %v997_v40 = vmul.f32 %v1778_v35, %v970_v29  ;;  %1789 = vrsqrt.f32 %v2109_v38  ;;  %v1104_v9 = vand.u32 2147483648, %v2107_v37  ;;  %v1008_v22 = vand.u32 2147483648, %v2109_v38 }
 0x19b   : > { %v1095_v41 = vsel %vm1094_vm3, %v1066_v28, %v1093_v36  ;;  %v1780_v43 = vpop.eup %1779  ;;  %vm1005_vm3 = vcmp.eq.f32.partialorder %v2109_v38, inf }
 0x19c   : > { %v1098_v44 = vsel %vm1096_vm4, %v1097_v39, %v1095_v41  ;;  %v999_v45 = vsel %vm998_vm6, %v970_v29, %v997_v40  ;;  %v1782_v46 = vpop.eup %1781  ;;  %v990_v49 = vmul.f32 %v1780_v43, %v2094_v30  ;;  %v2119_v52 = vpop.xlane.xlu0 %978  ;;  %vm1007_vm4 = vcmp.eq.f32.partialorder %v2109_v38, 0.0 }
 0x19d   : > { %v1142_v47 = vsub.f32 0.0, %v1098_v44  ;;  %v1002_v48 = vsel %vm1000_vm7, %v1001_v42, %v999_v45  ;;  %v2117_v51 = vpop.xlane.xlu1 %981  ;;  %v1011_v54 = vmul.f32 %v1782_v46, %v2096_v31  ;;  %v1022_v40 = vand.u32 2147483648, %v2119_v52 }
 0x19e   : > { %v1046_v53 = vsub.f32 0.0, %v1002_v48  ;;  %1791 = vrsqrt.f32 %v2117_v51  ;;  %v992_v55 = vsel %vm991_vm8, %v2094_v30, %v990_v49  ;;  %vm1026_vm6 = vcmp.eq.f32.partialorder %v2117_v51, inf }
 0x19f   : > { %1793 = vrsqrt.f32 %v2119_v52  ;;  %v1784_v57 = vpop.eup %1783  ;;  %v1013_v59 = vsel %vm1012_vm10, %v2096_v31, %v1011_v54  ;;  %v995_v1 = vsel %vm993_vm9, %v994_v50, %v992_v55  ;;  %vm1028_vm7 = vcmp.eq.f32.partialorder %v2117_v51, 0.0 }
 0x1a0   : > { %v1151_v58 = vsel %vm1149_vm2, %v1046_v53, %v1142_v47  ;;  %v1786_v60 = vpop.eup %1785  ;;  %v1086_v61 = vmul.f32 %v1784_v57, %v2100_v32  ;;  %v2142_v0 = vpop.xlane.xlu0 %1074  ;;  %v1016_v4 = vsel %vm1014_vm11, %v1015_v56, %v1013_v59  ;;  %v1045_v11 = vsub.f32 0.0, %v995_v1 }
 0x1a1   : > { %1160 = vst.msk [vmem:[%s2132_s21 + $0x8] sm:$0xff] %vm1158_vm5, %v1151_v58  ;;  %v2140_v63 = vpop.xlane.xlu1 %1077  ;;  %v1107_v2 = vmul.f32 %v1786_v60, %v2102_v33  ;;  %v1048_v17 = vsub.f32 0.0, %v1016_v4  ;;  %vm1019_vm8 = vcmp.eq.f32.partialorder %v2119_v52, inf  ;;  %vm1021_vm9 = vcmp.eq.f32.partialorder %v2119_v52, 0.0 }
 0x1a2   : > { %1795 = vrsqrt.f32 %v2140_v63  ;;  %v1088_v5 = vsel %vm1087_vm12, %v2100_v32, %v1086_v61  ;;  %vm1122_vm10 = vcmp.eq.f32.partialorder %v2140_v63, inf  ;;  %v1125_v44 = vand.u32 2147483648, %v2140_v63 }
 0x1a3   : > { %v1788_v6 = vpop.eup %1787  ;;  %v1091_v7 = vsel %vm1089_vm13, %v1090_v62, %v1088_v5  ;;  %v1109_v8 = vsel %vm1108_vm14, %v2102_v33, %v1107_v2  ;;  %1797 = vrsqrt.f32 %v2142_v0  ;;  %vm1124_vm11 = vcmp.eq.f32.partialorder %v2140_v63, 0.0 }
 0x1a4   : > { %v1790_v10 = vpop.eup %1789  ;;  %v1141_v12 = vsub.f32 0.0, %v1091_v7  ;;  %v1112_v13 = vsel %vm1110_vm15, %v1111_v3, %v1109_v8  ;;  %v1100_v14 = vmul.f32 %v1788_v6, %v2107_v37  ;;  %v2166_v16 = vpop.xlane.xlu0 %984  ;;  %vm1115_vm12 = vcmp.eq.f32.partialorder %v2142_v0, inf }
 0x1a5   : > { %v2164_v15 = vpop.xlane.xlu1 %987  ;;  %v1144_v18 = vsub.f32 0.0, %v1112_v13  ;;  %v1004_v19 = vmul.f32 %v1790_v10, %v2109_v38  ;;  %vm1117_vm13 = vcmp.eq.f32.partialorder %v2142_v0, 0.0  ;;  %v1118_v50 = vand.u32 2147483648, %v2142_v0 }
 0x1a6   : > { %1799 = vrsqrt.f32 %v2164_v15  ;;  %v1150_v20 = vsel %vm1149_vm2, %v1045_v11, %v1141_v12  ;;  %v1102_v21 = vsel %vm1101_vm0, %v2107_v37, %v1100_v14  ;;  %vm1040_vm14 = vcmp.eq.f32.partialorder %v2164_v15, inf }
 0x1a7   : > { %1159 = vst.msk [vmem:[%s2132_s21] sm:$0xff] %vm1158_vm5, %v1150_v20  ;;  %v1153_v24 = vsel %vm1149_vm2, %v1048_v17, %v1144_v18  ;;  %v1105_v25 = vsel %vm1103_vm1, %v1104_v9, %v1102_v21  ;;  %v1006_v26 = vsel %vm1005_vm3, %v2109_v38, %v1004_v19  ;;  %1801 = vrsqrt.f32 %v2166_v16 }
 0x1a8   : > { %v1792_v23 = vpop.eup %1791  ;;  %1162 = vst.msk [vmem:[%s2132_s21 + $0x18] sm:$0xff] %vm1158_vm5, %v1153_v24  ;;  %v1143_v28 = vsub.f32 0.0, %v1105_v25  ;;  %v1009_v29 = vsel %vm1007_vm4, %v1008_v22, %v1006_v26  ;;  %v2190_v35 = vpop.xlane.xlu0 %1080  ;;  %v1029_v38 = vand.u32 2147483648, %v2117_v51  ;;  %vm1042_vm15 = vcmp.eq.f32.partialorder %v2164_v15, 0.0 }
 0x1a9   : > { %v1794_v27 = vpop.eup %1793  ;;  %v1025_v30 = vmul.f32 %v1792_v23, %v2117_v51  ;;  %v1084_v31 = vpop.xlane.xlu1 %1083  ;;  %v1047_v32 = vsub.f32 0.0, %v1009_v29  ;;  %vm1033_vm0 = vcmp.eq.f32.partialorder %v2166_v16, inf  ;;  %v1036_v6 = vand.u32 2147483648, %v2166_v16 }
 0x1aa   : > { %v1018_v33 = vmul.f32 %v1794_v27, %v2119_v52  ;;  %1803 = vrsqrt.f32 %v1084_v31  ;;  %vm1136_vm1 = vcmp.eq.f32.partialorder %v1084_v31, inf  ;;  %v1139_v4 = vand.u32 2147483648, %v1084_v31 }
 0x1ab   : > { %v1027_v34 = vsel %vm1026_vm6, %v2117_v51, %v1025_v30  ;;  %v1152_v37 = vsel %vm1149_vm2, %v1047_v32, %v1143_v28  ;;  %1805 = vrsqrt.f32 %v2190_v35  ;;  %vm1138_vm3 = vcmp.eq.f32.partialorder %v1084_v31, 0.0 }
 0x1ac   : > { %v1796_v36 = vpop.eup %1795  ;;  %1161 = vst.msk [vmem:[%s2132_s21 + $0x10] sm:$0xff] %vm1158_vm5, %v1152_v37  ;;  %v1020_v39 = vsel %vm1019_vm8, %v2119_v52, %v1018_v33  ;;  %v1030_v43 = vsel %vm1028_vm7, %v1029_v38, %v1027_v34  ;;  %vm1035_vm4 = vcmp.eq.f32.partialorder %v2166_v16, 0.0  ;;  %vm1129_vm6 = vcmp.eq.f32.partialorder %v2190_v35, inf }
 0x1ad   : > { %v1121_v41 = vmul.f32 %v1796_v36, %v2140_v63  ;;  %v1798_v42 = vpop.eup %1797  ;;  %v1023_v48 = vsel %vm1021_vm9, %v1022_v40, %v1020_v39  ;;  %v1050_v51 = vsub.f32 0.0, %v1030_v43  ;;  %v1132_v13 = vand.u32 2147483648, %v2190_v35 }
 0x1ae   : > { %v1114_v46 = vmul.f32 %v1798_v42, %v2142_v0  ;;  %v1049_v57 = vsub.f32 0.0, %v1023_v48  ;;  %vm1131_vm7 = vcmp.eq.f32.partialorder %v2190_v35, 0.0 }
 0x1af   : > { %v1123_v45 = vsel %vm1122_vm10, %v2140_v63, %v1121_v41 }
 0x1b0   : > { %v1800_v47 = vpop.eup %1799  ;;  %v1126_v49 = vsel %vm1124_vm11, %v1125_v44, %v1123_v45  ;;  %v1116_v53 = vsel %vm1115_vm12, %v2142_v0, %v1114_v46  ;;  %v1043_v0 = vand.u32 2147483648, %v2164_v15 }
 0x1b1   : > { %v1146_v52 = vsub.f32 0.0, %v1126_v49  ;;  %v1039_v54 = vmul.f32 %v1800_v47, %v2164_v15  ;;  %v1119_v55 = vsel %vm1117_vm13, %v1118_v50, %v1116_v53  ;;  %v1802_v56 = vpop.eup %1801 }
 0x1b2   : > { %v1145_v59 = vsub.f32 0.0, %v1119_v55  ;;  %v1032_v61 = vmul.f32 %v1802_v56, %v2166_v16 }
 0x1b3   : > { %v1155_v58 = vsel %vm1149_vm2, %v1050_v51, %v1146_v52  ;;  %v1041_v60 = vsel %vm1040_vm14, %v2164_v15, %v1039_v54 }
 0x1b4   : > { %1164 = vst.msk [vmem:[%s2132_s21 + $0x28] sm:$0xff] %vm1158_vm5, %v1155_v58  ;;  %v1804_v62 = vpop.eup %1803  ;;  %v1154_v63 = vsel %vm1149_vm2, %v1049_v57, %v1145_v59  ;;  %v1044_v2 = vsel %vm1042_vm15, %v1043_v0, %v1041_v60  ;;  %v1034_v3 = vsel %vm1033_vm0, %v2166_v16, %v1032_v61 }
 0x1b5   : > { %1163 = vst.msk [vmem:[%s2132_s21 + $0x20] sm:$0xff] %vm1158_vm5, %v1154_v63  ;;  %v1135_v1 = vmul.f32 %v1804_v62, %v1084_v31  ;;  %v1806_v5 = vpop.eup %1805  ;;  %v1052_v10 = vsub.f32 0.0, %v1044_v2  ;;  %v1037_v11 = vsel %vm1035_vm4, %v1036_v6, %v1034_v3 }
 0x1b6   : > { %v1128_v9 = vmul.f32 %v1806_v5, %v2190_v35  ;;  %v1051_v18 = vsub.f32 0.0, %v1037_v11 }
 0x1b7   : > { %v1137_v7 = vsel %vm1136_vm1, %v1084_v31, %v1135_v1  ;;  %1173 = sbr.rel (!%p1955_p4) target bundleno = 495 (0x1ef), region = 48 }
 0x1b8   : > { %v1140_v8 = vsel %vm1138_vm3, %v1139_v4, %v1137_v7  ;;  %v1130_v14 = vsel %vm1129_vm6, %v2190_v35, %v1128_v9 }
 0x1b9   : > { %v1148_v12 = vsub.f32 0.0, %v1140_v8  ;;  %v1133_v17 = vsel %vm1131_vm7, %v1132_v13, %v1130_v14 }
 0x1ba   : > { %v1147_v16 = vsub.f32 0.0, %v1133_v17 }
 0x1bb   : > { %v1157_v15 = vsel %vm1149_vm2, %v1052_v10, %v1148_v12 }
 0x1bc   : > { %1166 = vst.msk [vmem:[%s2132_s21 + $0x38] sm:$0xff] %vm1158_vm5, %v1157_v15  ;;  %v1156_v19 = vsel %vm1149_vm2, %v1051_v18, %v1147_v16 }
 0x1bd   : > { %1165 = vst.msk [vmem:[%s2132_s21 + $0x30] sm:$0xff] %vm1158_vm5, %v1156_v19 }
 0x1be   : > { %s2315_s26 = smov (!%p1176_p8, %s1175_s26), 8 }
 0x1bf   : > { %s1493_s9 = sshll.u32 %s2315_s26, 7 }
 0x1c0   : > { %p1496_p9 = scmp.eq.s32.totalorder %s1493_s9, 0 }
 0x1c1   : > { %s2252_s10 = sshrl.u32 (!%p1496_p9), %s2315_s26, 3 }
 0x1c2   : > { %1184 = sbr.rel (%p1496_p9) target bundleno = 495 (0x1ef), region = 52  ;;  %p1497_p10 = scmp.le.s32.totalorder (!%p1496_p9), %s2252_s10, 0 }
 0x1c9   : > { %1384 = sbr.rel (%p1497_p10) target bundleno = 474 (0x1da), region = 137  ;;  %s2308_s24 = smov (!%p1497_p10), %s2246_s8 }
 0x1ca   : > { %s2309_s29 = smov (!%p1497_p10), %s2132_s21  ;;  %s2261_s12 = smov (!%p1497_p10), 0  }
 0x1cb   : > { %s2263_s11 = smov (!%p1497_p10), 0  }
 0x1d0 LB: >> { %v1260_v20 = vld [vmem:[%s1869_s29] sm:$0xff]  ;;  %v1262_v21 = vld [vmem:[%s1869_s29 + $0x8] sm:$0xff]  ;;  %v1264_v22 = vld [vmem:[%s1869_s29 + $0x10] sm:$0xff]  ;;  %s1276_s13 = sadd.s32 1, %s1873_s12  ;;  %s1254_s11 = sadd.s32 1, %s1877_s11   ;;  %s1877_s11 = sphi %s2263_s11, %s1254_s11   ;;  %s1873_s12 = sphi %s2261_s12, %s2310_s12   ;;  %s1869_s29 = sphi %s2309_s29, %s1281_s29   ;;  %s1865_s24 = sphi %s2308_s24, %s1282_s24  }
 0x1d1   : >> { %1261 = vst [vmem:[%s1865_s24] sm:$0xff] %v1260_v20  ;;  %1263 = vst [vmem:[%s1865_s24 + $0x8] sm:$0xff] %v1262_v21  ;;  %v1266_v23 = vld [vmem:[%s1869_s29 + $0x18] sm:$0xff]  ;;  %v1268_v24 = vld [vmem:[%s1869_s29 + $0x20] sm:$0xff]  ;;  %p1277_p11 = scmp.ge.s32.totalorder %s1276_s13, %s2252_s10  ;;  %p1253_p12 = scmp.ge.s32.totalorder %s1254_s11, %s2252_s10 }
 0x1d2   : >> { %1265 = vst [vmem:[%s1865_s24 + $0x10] sm:$0xff] %v1264_v22  ;;  %v1270_v25 = vld [vmem:[%s1869_s29 + $0x28] sm:$0xff]  ;;  %1267 = vst [vmem:[%s1865_s24 + $0x18] sm:$0xff] %v1266_v23  ;;  %v1272_v26 = vld [vmem:[%s1869_s29 + $0x30] sm:$0xff] }
 0x1d3   : >> { %1269 = vst [vmem:[%s1865_s24 + $0x20] sm:$0xff] %v1268_v24  ;;  %1271 = vst [vmem:[%s1865_s24 + $0x28] sm:$0xff] %v1270_v25  ;;  %v1274_v27 = vld [vmem:[%s1869_s29 + $0x38] sm:$0xff]  ;;  %s2317_s13 = smov (%p1277_p11, %s1276_s13), 0  ;;  %1256 = sbr.rel (!%p1253_p12) target bundleno = 464 (0x1d0), region = 143 }
 0x1d4   : >> { %1273 = vst [vmem:[%s1865_s24 + $0x30] sm:$0xff] %v1272_v26  ;;  %1275 = vst [vmem:[%s1865_s24 + $0x38] sm:$0xff] %v1274_v27  ;;  %s1498_s14 = sshll.u32 %s2317_s13, 6  ;;  %s2310_s12 = smov %s2317_s13 }
 0x1d5   : >> { %s1281_s29 = scalar_lea.vmem %s2132_s21, %s1498_s14 [#allocation2]   ;;  %s1282_s24 = scalar_lea.vmem %s2246_s8, %s1498_s14  }
 0x1da PF: > { %s2282_s15 = sand.u32 7, %s2315_s26   ;;  %s1509_s16 = sshll.u32 %s2252_s10, 6 }
 0x1db   : > { %s1287_s17 = scalar_lea.vmem %s2132_s21, %s1509_s16 [#allocation2]   ;;  %s1289_s18 = scalar_lea.vmem %s2246_s8, %s1509_s16  }
 0x1dc   : > { %p1503_p13 = scmp.le.s32.totalorder %s2282_s15, 0 }
 0x1dd   : > { %s1879_s19 = smov (!%p1503_p13), %s1289_s18   ;;  %s1883_s20 = smov (!%p1503_p13), %s1287_s17  }
 0x1de   : > { %1398 = sbr.rel (%p1503_p13) target bundleno = 495 (0x1ef), region = 148  ;;  %s1887_s23 = smov (!%p1503_p13), 0  }
 0x1df   : > { %s1891_s27 = smov (!%p1503_p13), 0  }
 0x1e5 LB: >> { %v1299_v28 = vld [vmem:[%s1885_s20] sm:$0xff]  ;;  %s1301_s26 = sadd.s32 1, %s1889_s23  ;;  %s1293_s27 = sadd.s32 1, %s1893_s27   ;;  %s1893_s27 = sphi %s1891_s27, %s1293_s27   ;;  %s1889_s23 = sphi %s1887_s23, %s1888_s23   ;;  %s1885_s20 = sphi %s1883_s20, %s1306_s20   ;;  %s1881_s19 = sphi %s1879_s19, %s1307_s19  }
 0x1e6   : >> { %1300 = vst [vmem:[%s1881_s19] sm:$0xff] %v1299_v28  ;;  %p1302_p0 = scmp.ge.s32.totalorder %s1301_s26, %s2282_s15  ;;  %p1292_p1 = scmp.ge.s32.totalorder %s1293_s27, %s2282_s15 }
 0x1e8   : >> { %s2319_s26 = smov (%p1302_p0, %s1301_s26), 0  ;;  %1295 = sbr.rel (!%p1292_p1) target bundleno = 485 (0x1e5), region = 154 }
 0x1e9   : >> { %s1504_s21 = sshll.u32 %s2319_s26, 3  ;;  %s1888_s23 = smov %s2319_s26  }
 0x1ea   : >> { %s1306_s20 = scalar_lea.vmem %s1287_s17, %s1504_s21 [#allocation2]   ;;  %s1307_s19 = scalar_lea.vmem %s1289_s18, %s1504_s21  }
 0x1ef PF: > { %p13_p2 = scmp.ge.s32.totalorder %s1945_s25, 6   ;;  %s2311_s21 = smov %s1857_s22 }
 0x1f0   : > { %s2312_s22 = smov %s1953_s28  ;;  %s2313_s23 = smov %s1945_s25 }
 0x1f1   :  { %15 = sbr.rel (!%p13_p2) target bundleno = 2 (0x2), region = 165 }

</bundles_post_ra>
